<compile_context>
chip_gen: v6e
topology: v6e:2x2x1
jax: 0.10.0
libtpu: 0.0.40
codegen_flags: <defaults>
</compile_context>

<pallas_src>
import jax
import jax.numpy as jnp
from jax.experimental import pallas as pl
from jax.experimental.pallas import tpu as pltpu


def mlp_kernel(x_ref, w1_ref, b1_ref, w2_ref, b2_ref, w3_ref, b3_ref, o_ref):
    # x_ref: (13, TB) f32, weights (out, in), biases (out, 1), o_ref: (1, TB).
    x = x_ref[...]

    h1 = jnp.dot(w1_ref[...], x, preferred_element_type=jnp.float32) + b1_ref[...]
    h1 = jnp.maximum(h1, 0.0)                               # (20, TB)

    h2 = jnp.dot(w2_ref[...], h1, preferred_element_type=jnp.float32) + b2_ref[...]
    h2 = jnp.maximum(h2, 0.0)                               # (20, TB)

    y = jnp.dot(w3_ref[...], h2, preferred_element_type=jnp.float32) + b3_ref[...]
    o_ref[...] = y.astype(o_ref.dtype)                      # (1, TB)


def _round_up(n, m):
    return ((n + m - 1) // m) * m


def housing_model_forward(x, params, *, tile_b=1024):
    """x: (B, 13) float32 -> (B, 1) float32."""
    w1, b1, w2, b2, w3, b3 = params
    B, F = x.shape
    assert F == 13

    # Tile size on the lane (batch) axis: multiple of 128, capped at tile_b.
    tb = min(tile_b, _round_up(B, 128))
    b_pad = _round_up(B, tb)
    grid = (b_pad // tb,)

    # Feature-major layout with batch on the lane axis, zero-padded batch tail.
    xt = jnp.pad(x.T, ((0, 0), (0, b_pad - B)))             # (13, b_pad)

    const = lambda i: (0, 0)  # params resident in VMEM across all grid steps
    out = pl.pallas_call(
        mlp_kernel,
        out_shape=jax.ShapeDtypeStruct((1, b_pad), jnp.float32),
        grid=grid,
        in_specs=[
            pl.BlockSpec((13, tb), lambda i: (0, i)),        # x tile
            pl.BlockSpec((20, 13), const),                   # w1
            pl.BlockSpec((20, 1), const),                    # b1
            pl.BlockSpec((20, 20), const),                   # w2
            pl.BlockSpec((20, 1), const),                    # b2
            pl.BlockSpec((1, 20), const),                    # w3
            pl.BlockSpec((1, 1), const),                     # b3
        ],
        out_specs=pl.BlockSpec((1, tb), lambda i: (0, i)),   # lane-dense output
        compiler_params=pltpu.CompilerParams(
            dimension_semantics=("parallel",),
        ),
    )(xt, w1, b1, w2, b2, w3, b3)

    return out[0, :B].reshape(B, 1)


def init_params(key):
    """Deterministic init mimicking PyTorch nn.Linear (uniform +/- 1/sqrt(fan_in)).
    Weights stored PyTorch-style (out, in); biases stored as (out, 1)."""
    dims = [(13, 20), (20, 20), (20, 1)]
    params = []
    keys = jax.random.split(key, 2 * len(dims))
    for i, (fan_in, fan_out) in enumerate(dims):
        bound = 1.0 / jnp.sqrt(float(fan_in))
        w = jax.random.uniform(
            keys[2 * i], (fan_out, fan_in), jnp.float32, -bound, bound
        )
        b = jax.random.uniform(
            keys[2 * i + 1], (fan_out, 1), jnp.float32, -bound, bound
        )
        params += [w, b]
    return tuple(params)


def reference_forward(x, params):
    w1, b1, w2, b2, w3, b3 = params
    h1 = jnp.maximum(x @ w1.T + b1.T, 0.0)
    h2 = jnp.maximum(h1 @ w2.T + b2.T, 0.0)
    return h2 @ w3.T + b3.T


if __name__ == "__main__":
    key = jax.random.PRNGKey(0)
    pkey, xkey = jax.random.split(key)
    params = init_params(pkey)

    # Small test batch (not a multiple of 128 -> exercises the pad/un-pad path).
    batch = 8
    x = jax.random.normal(xkey, (batch, 13), dtype=jnp.float32)

    out = housing_model_forward(x, params)
    out = jax.block_until_ready(out)

    ref = reference_forward(x, params)
    assert out.shape == (batch, 1), out.shape
    assert jnp.allclose(out, ref, atol=1e-5, rtol=1e-5), "mismatch vs reference"

    # Also sanity-check a batch spanning multiple tiles / with a partial tail.
    big_b = 2048 + 37
    xb = jax.random.normal(jax.random.PRNGKey(1), (big_b, 13), dtype=jnp.float32)
    out_b = jax.block_until_ready(housing_model_forward(xb, params))
    ref_b = reference_forward(xb, params)
    assert out_b.shape == (big_b, 1), out_b.shape
    assert jnp.allclose(out_b, ref_b, atol=1e-5, rtol=1e-5), "mismatch (big batch)"

    print("KERNEL_OK")
</pallas_src>

<mosaic_0001>
module attributes {stable_mosaic.version = 11 : i64} {
  func.func @mlp_kernel(%arg0: i32, %arg1: memref<13x128xf32, #tpu.memory_space<vmem>>, %arg2: memref<20x13xf32, #tpu.memory_space<vmem>>, %arg3: memref<20x1xf32, #tpu.memory_space<vmem>>, %arg4: memref<20x20xf32, #tpu.memory_space<vmem>>, %arg5: memref<20x1xf32, #tpu.memory_space<vmem>>, %arg6: memref<1x20xf32, #tpu.memory_space<vmem>>, %arg7: memref<1x1xf32, #tpu.memory_space<vmem>>, %arg8: memref<1x128xf32, #tpu.memory_space<vmem>>) attributes {dimension_semantics = [#tpu.dimension_semantics<parallel>], iteration_bounds = array<i64: 1>, scalar_prefetch = 0 : i64, scratch_operands = 0 : i64, tpu.core_type = #tpu.core_type<tc>, window_params = [{transform_indices = @transform_0, window_bounds = array<i64: 13, 128>}, {pipeline_mode = #tpu.pipeline_mode<synchronous>, transform_indices = @transform_1, window_bounds = array<i64: 20, 13>}, {pipeline_mode = #tpu.pipeline_mode<synchronous>, transform_indices = @transform_2, window_bounds = array<i64: 20, 1>}, {pipeline_mode = #tpu.pipeline_mode<synchronous>, transform_indices = @transform_3, window_bounds = array<i64: 20, 20>}, {pipeline_mode = #tpu.pipeline_mode<synchronous>, transform_indices = @transform_4, window_bounds = array<i64: 20, 1>}, {pipeline_mode = #tpu.pipeline_mode<synchronous>, transform_indices = @transform_5, window_bounds = array<i64: 1, 20>}, {pipeline_mode = #tpu.pipeline_mode<synchronous>, transform_indices = @transform_6, window_bounds = array<i64: 1, 1>}, {transform_indices = @transform_7, window_bounds = array<i64: 1, 128>}]} {
    %c0 = arith.constant 0 : index
    %c0_0 = arith.constant 0 : index
    %0 = vector.load %arg1[%c0, %c0_0] : memref<13x128xf32, #tpu.memory_space<vmem>>, vector<13x128xf32>
    %c0_1 = arith.constant 0 : index
    %c0_2 = arith.constant 0 : index
    %1 = vector.load %arg2[%c0_1, %c0_2] : memref<20x13xf32, #tpu.memory_space<vmem>>, vector<20x13xf32>
    %cst = arith.constant dense<0.000000e+00> : vector<20x128xf32>
    %2 = tpu.matmul %1, %0, %cst {dimension_numbers = #tpu.dot_dimension_numbers<[1], [0], [0], [1], [0, 0, 1, 1], [], []>} : vector<20x13xf32>, vector<13x128xf32>, vector<20x128xf32> -> vector<20x128xf32>
    %c0_3 = arith.constant 0 : index
    %c0_4 = arith.constant 0 : index
    %3 = vector.load %arg3[%c0_3, %c0_4] : memref<20x1xf32, #tpu.memory_space<vmem>>, vector<20x1xf32>
    %4 = vector.broadcast %3 : vector<20x1xf32> to vector<20x128xf32>
    %5 = arith.addf %2, %4 : vector<20x128xf32>
    %cst_5 = arith.constant 0.000000e+00 : f32
    %6 = vector.broadcast %cst_5 : f32 to vector<20x128xf32>
    %7 = arith.maximumf %5, %6 : vector<20x128xf32>
    %c0_6 = arith.constant 0 : index
    %c0_7 = arith.constant 0 : index
    %8 = vector.load %arg4[%c0_6, %c0_7] : memref<20x20xf32, #tpu.memory_space<vmem>>, vector<20x20xf32>
    %cst_8 = arith.constant dense<0.000000e+00> : vector<20x128xf32>
    %9 = tpu.matmul %8, %7, %cst_8 {dimension_numbers = #tpu.dot_dimension_numbers<[1], [0], [0], [1], [0, 0, 1, 1], [], []>} : vector<20x20xf32>, vector<20x128xf32>, vector<20x128xf32> -> vector<20x128xf32>
    %c0_9 = arith.constant 0 : index
    %c0_10 = arith.constant 0 : index
    %10 = vector.load %arg5[%c0_9, %c0_10] : memref<20x1xf32, #tpu.memory_space<vmem>>, vector<20x1xf32>
    %11 = vector.broadcast %10 : vector<20x1xf32> to vector<20x128xf32>
    %12 = arith.addf %9, %11 : vector<20x128xf32>
    %cst_11 = arith.constant 0.000000e+00 : f32
    %13 = vector.broadcast %cst_11 : f32 to vector<20x128xf32>
    %14 = arith.maximumf %12, %13 : vector<20x128xf32>
    %c0_12 = arith.constant 0 : index
    %c0_13 = arith.constant 0 : index
    %15 = vector.load %arg6[%c0_12, %c0_13] : memref<1x20xf32, #tpu.memory_space<vmem>>, vector<1x20xf32>
    %cst_14 = arith.constant dense<0.000000e+00> : vector<1x128xf32>
    %16 = tpu.matmul %15, %14, %cst_14 {dimension_numbers = #tpu.dot_dimension_numbers<[1], [0], [0], [1], [0, 0, 1, 1], [], []>} : vector<1x20xf32>, vector<20x128xf32>, vector<1x128xf32> -> vector<1x128xf32>
    %c0_15 = arith.constant 0 : index
    %c0_16 = arith.constant 0 : index
    %17 = vector.load %arg7[%c0_15, %c0_16] : memref<1x1xf32, #tpu.memory_space<vmem>>, vector<1x1xf32>
    %18 = vector.broadcast %17 : vector<1x1xf32> to vector<1x128xf32>
    %19 = arith.addf %16, %18 : vector<1x128xf32>
    %c0_17 = arith.constant 0 : index
    %c0_18 = arith.constant 0 : index
    %20 = vector.load %arg8[%c0_17, %c0_18] : memref<1x128xf32, #tpu.memory_space<vmem>>, vector<1x128xf32>
    tpu.vector_store %arg8[%c0_17, %c0_18], %19 {strides = array<i32>} : memref<1x128xf32, #tpu.memory_space<vmem>>, vector<1x128xf32>,
    return
  }
  func.func @transform_0(%arg0: i32) -> (i32, i32) {
    %c0_i32 = arith.constant 0 : i32
    %c0_i32_0 = arith.constant 0 : i32
    return %c0_i32, %arg0 : i32, i32
  }
  func.func @transform_1(%arg0: i32) -> (i32, i32) {
    %c0_i32 = arith.constant 0 : i32
    %c0_i32_0 = arith.constant 0 : i32
    %c0_i32_1 = arith.constant 0 : i32
    return %c0_i32, %c0_i32_0 : i32, i32
  }
  func.func @transform_2(%arg0: i32) -> (i32, i32) {
    %c0_i32 = arith.constant 0 : i32
    %c0_i32_0 = arith.constant 0 : i32
    %c0_i32_1 = arith.constant 0 : i32
    return %c0_i32, %c0_i32_0 : i32, i32
  }
  func.func @transform_3(%arg0: i32) -> (i32, i32) {
    %c0_i32 = arith.constant 0 : i32
    %c0_i32_0 = arith.constant 0 : i32
    %c0_i32_1 = arith.constant 0 : i32
    return %c0_i32, %c0_i32_0 : i32, i32
  }
  func.func @transform_4(%arg0: i32) -> (i32, i32) {
    %c0_i32 = arith.constant 0 : i32
    %c0_i32_0 = arith.constant 0 : i32
    %c0_i32_1 = arith.constant 0 : i32
    return %c0_i32, %c0_i32_0 : i32, i32
  }
  func.func @transform_5(%arg0: i32) -> (i32, i32) {
    %c0_i32 = arith.constant 0 : i32
    %c0_i32_0 = arith.constant 0 : i32
    %c0_i32_1 = arith.constant 0 : i32
    return %c0_i32, %c0_i32_0 : i32, i32
  }
  func.func @transform_6(%arg0: i32) -> (i32, i32) {
    %c0_i32 = arith.constant 0 : i32
    %c0_i32_0 = arith.constant 0 : i32
    %c0_i32_1 = arith.constant 0 : i32
    return %c0_i32, %c0_i32_0 : i32, i32
  }
  func.func @transform_7(%arg0: i32) -> (i32, i32) {
    %c0_i32 = arith.constant 0 : i32
    %c0_i32_0 = arith.constant 0 : i32
    return %c0_i32, %arg0 : i32, i32
  }
}

</mosaic_0001>

<bundles_post_ra>
// kernel: tpu_custom_call.1
= control target key start
LH: loop header
LB: loop body
LE: loop exit
PB: predicated region body
PF: predicated region fallthrough
CT: control target
= control target key end

     0   :  { %s585_s0 = inlined_call_operand.vmem [shape: f32[13,128], index: 0, kind: input, shape index: {}]   ;;  %s586_s1 = inlined_call_operand.vmem [shape: f32[20,13], index: 1, kind: input, shape index: {}]   ;;  %s587_s2 = inlined_call_operand.vmem [shape: f32[20,1], index: 2, kind: input, shape index: {}]   ;;  %s588_s3 = inlined_call_operand.vmem [shape: f32[20,20], index: 3, kind: input, shape index: {}]   ;;  %s589_s4 = inlined_call_operand.vmem [shape: f32[20,1], index: 4, kind: input, shape index: {}]   ;;  %s590_s5 = inlined_call_operand.vmem [shape: f32[1,20], index: 5, kind: input, shape index: {}]   ;;  %s591_s6 = inlined_call_operand.<no memory space> [shape: f32[1,1], index: 6, kind: input, shape index: {}]   ;;  %s592_s7 = inlined_call_operand.hbm [shape: f32[1,128], index: 7, kind: output, shape index: {}]  }
   0x1   :  { %v12_v0 = vstv %s591_s6 }
   0x2   :  { %13 = vst [vmem:[#allocation2] sm:$0x1] %v12_v0 }
   0x3   :  { %v30_v1 = vld [vmem:[%s585_s0 + $0x8] sm:$0x1f]  ;;  %vm62_vm0 = vcmask 1044480   ;;  %v459_v2 = vmov 0.0   ;;  %v29_v3 = vld [vmem:[%s585_s0] sm:$0xff]  ;;  %vm460_vm1 = vmmov 0  }
   0x4   :  { %394 = vmatprep.subr.mxu0 %v459_v2  ;;  %398 = vmatprep.mubr.msk.f32.mxu0 %vm460_vm1, %v459_v2  ;;  %v31_v4 = vld [vmem:[%s586_s1] sm:$0xff]  ;;  %vm52_vm2 = vcmask 105472   ;;  %v461_v5 = vmov 0   ;;  %v36_v6 = vld [vmem:[%s587_s2 + $0x10] sm:$0xf]  ;;  %v35_v8 = vld [vmem:[%s587_s2 + $0x8] sm:$0xff] }
   0x5   :  { %395 = vmatpush3.msk.msra.mxu0 %vm62_vm0, %v30_v1  ;;  %435 = vset.pattern.permute.xlu0 %v461_v5  ;;  %v34_v7 = vld [vmem:[%s587_s2] sm:$0xff] }
   0x6   :  { %396 = vmatprep.subr.mxu0 %v459_v2  ;;  %49 = vperm.xlu0 %435, %v36_v6  }
   0x7   :  { %397 = vmatpush3.msra.mxu0 %v29_v3  ;;  %436 = vset.pattern.permute.xlu1 %v461_v5 }
   0x8   :  { %14 = vsyncpa [#allocation4], 0  ;;  %399 = vmatmul.mubr.msk.f32.vlgmr.msra.gmra.mxu0 %vm52_vm2, %v31_v4  ;;  %39 = vperm.xlu1 %436, %v34_v7   ;;  %v32_v9 = vld [vmem:[%s586_s1 + $0x8] sm:$0xff]  ;;  %v154_v10 = vld [vmem:[%s589_s4 + $0x10] sm:$0xf]  ;;  %vm180_vm3 = vcmask 1043456   ;;  %v274_v49 = vlaneseq }
   0x9   :  { %401 = vmatprep.mubr.msk.f32.mxu0 %vm460_vm1, %v459_v2  ;;  %407 = vmatprep.subr.mxu1 %v459_v2  ;;  %v153_v11 = vld [vmem:[%s589_s4 + $0x8] sm:$0xff]  ;;  %v33_v12 = vld [vmem:[%s586_s1 + $0x10] sm:$0xf]  ;;  %v152_v13 = vld [vmem:[%s589_s4] sm:$0xff]  ;;  %vm170_vm4 = vcmask 162816   ;;  %s462_s27 = smov [#allocation3]  }
   0xa   :  { %44 = vperm.xlu0 %435, %v35_v8   ;;  %413 = vmatprep.mubr.msk.f32.mxu1 %vm460_vm1, %v459_v2  ;;  %v268_v14 = vld [vmem:[#allocation2] sm:$0x1]  ;;  %v150_v31 = vld [vmem:[%s588_s3 + $0x8] sm:$0xff]  ;;  %v151_v32 = vld [vmem:[%s588_s3 + $0x10] sm:$0xf]  ;;  %v275_v50 = vshrl.u32 %v274_v49, 7 }
   0xb   :  { %422 = vmatprep.subr.mxu0 %v459_v2  ;;  %v149_v30 = vld [vmem:[%s588_s3] sm:$0xff]  ;;  %s361_s28 = sshll.u32 %s462_s27, 4  ;;  %s362_s28 = int_to_ptr.vmem [resolvable:$true] %s361_s28 }
   0xc   :  { %402 = vmatmul.mubr.msk.f32.gmra.mxu0 %vm52_vm2, %v32_v9  ;;  %167 = vperm.xlu1 %436, %v154_v10   ;;  %v267_v48 = vld [vmem:[%s590_s5] sm:$0x1]  ;;  %v276_v51 = vsub.s32 0, %v275_v50  ;;  %s437_s29 = scalar_lea.vmem %s362_s28, 16  ;;  %s441_s5 = scalar_lea.vmem %s362_s28, 32 }
   0xd   :  { %404 = vmatprep.mubr.msk.f32.mxu0 %vm460_vm1, %v459_v2  ;;  %p438_p0 = scmp.ne.s32.totalorder %s362_s28, %s437_s29  ;;  %p442_p1 = scmp.lt.s32.totalorder %s362_s28, %s362_s28 }
   0xe   :  { %162 = vperm.xlu0 %435, %v153_v11   ;;  %p443_p2 = scmp.lt.s32.totalorder %s441_s5, %s437_s29 }
  0x10   :  { %405 = vmatmul.mubr.msk.f32.gmra.mxu0 %vm52_vm2, %v33_v12  ;;  %157 = vperm.xlu1 %436, %v152_v13   ;;  %p444_p3 = por %p443_p2, %p442_p1 }
  0x11   :  { %428 = vmatprep.mubr.msk.f32.mxu0 %vm460_vm1, %v459_v2 }
  0x12   :  { %271 = vperm.xlu0 %435, %v268_v14   ;;  %p445_p4 = pnand %p444_p3, %p438_p0 }
  0x81   :  { %v50_v16 = vpop.permute.xlu0 %49 }
  0x83   :  { %v40_v20 = vpop.permute.xlu1 %39 }
  0x85   :  { %v45_v21 = vpop.permute.xlu0 %44 }
  0x87   :  { %v168_v35 = vpop.permute.xlu1 %167 }
  0x89   :  { %v163_v38 = vpop.permute.xlu0 %162 }
  0x8b   :  { %v158_v42 = vpop.permute.xlu1 %157 }
  0x8d   :  { %v272_v52 = vpop.permute.xlu0 %271 }
  0x8e   :  { %v277_v53 = vrot.slane %v272_v52, %v276_v51 }
  0xc8   :  { %v132_v15 = vpop.f32.mrf.mxu0 }
  0xc9   :  { %v133_v26 = vadd.f32 %v132_v15, %v40_v20 }
  0xca   :  { %v400_v17 = vpop.f32.mrf.mxu0 }
  0xcb   :  { %v146_v29 = vmax.f32 %v133_v26, 0.0 }
  0xcc   :  { %v137_v18 = vpop.f32.mrf.mxu0 }
  0xcd   :  { %v138_v23 = vadd.f32 %v137_v18, %v45_v21 }
  0xce   :  { %v403_v19 = vpop.f32.mrf.mxu0 }
  0xcf   :  { %v147_v28 = vmax.f32 %v138_v23, 0.0 }
  0xd0   :  { %v142_v22 = vpop.f32.mrf.mxu0 }
  0xd1   :  { %v143_v24 = vadd.f32 %v142_v22, %v50_v16 }
  0xd2   :  { %v406_v25 = vpop.f32.mrf.mxu0 }
  0xd3   :  { %v148_v27 = vmax.f32 %v143_v24, 0.0 }
  0xd5   :  { %408 = vmatpush3.msk.msra.mxu1 %vm180_vm3, %v148_v27 }
  0xd6   :  { %409 = vmatprep.subr.mxu1 %v459_v2 }
  0xd7   :  { %410 = vmatpush3.msra.mxu1 %v147_v28 }
  0xd8   :  { %411 = vmatprep.subr.mxu1 %v459_v2 }
  0xd9   :  { %412 = vmatpush3.msra.mxu1 %v146_v29 }
  0xda   :  { %414 = vmatmul.mubr.msk.f32.vlgmr.msra.gmra.mxu1 %vm170_vm4, %v149_v30 }
  0xdb   :  { %416 = vmatprep.mubr.msk.f32.mxu1 %vm460_vm1, %v459_v2 }
  0xde   :  { %417 = vmatmul.mubr.msk.f32.gmra.mxu1 %vm170_vm4, %v150_v31 }
  0xdf   :  { %419 = vmatprep.mubr.msk.f32.mxu1 %vm460_vm1, %v459_v2 }
  0xe2   :  { %420 = vmatmul.mubr.msk.f32.gmra.mxu1 %vm170_vm4, %v151_v32 }
 0x19a   :  { %v250_v33 = vpop.f32.mrf.mxu1 }
 0x19b   :  { %v251_v44 = vadd.f32 %v250_v33, %v158_v42 }
 0x19c   :  { %v415_v34 = vpop.f32.mrf.mxu1 }
 0x19d   :  { %v264_v47 = vmax.f32 %v251_v44, 0.0 }
 0x19e   :  { %v255_v36 = vpop.f32.mrf.mxu1 }
 0x19f   :  { %v256_v40 = vadd.f32 %v255_v36, %v163_v38 }
 0x1a0   :  { %v418_v37 = vpop.f32.mrf.mxu1 }
 0x1a1   :  { %v265_v46 = vmax.f32 %v256_v40, 0.0 }
 0x1a2   :  { %v260_v39 = vpop.f32.mrf.mxu1 }
 0x1a3   :  { %v261_v41 = vadd.f32 %v260_v39, %v168_v35 }
 0x1a4   :  { %v421_v43 = vpop.f32.mrf.mxu1 }
 0x1a5   :  { %v266_v45 = vmax.f32 %v261_v41, 0.0 }
 0x1a7   :  { %423 = vmatpush3.msk.msra.mxu0 %vm180_vm3, %v266_v45 }
 0x1a8   :  { %424 = vmatprep.subr.mxu0 %v459_v2 }
 0x1a9   :  { %425 = vmatpush3.msra.mxu0 %v265_v46 }
 0x1aa   :  { %426 = vmatprep.subr.mxu0 %v459_v2 }
 0x1ab   :  { %427 = vmatpush3.msra.mxu0 %v264_v47 }
 0x1ac   :  { %429 = vmatmul.mubr.msk.f32.vlgmr.msra.gmra.mxu0 %vm170_vm4, %v267_v48 }
 0x26c   :  { %v350_v54 = vpop.f32.mrf.mxu0 }
 0x26d   :  { %v351_v55 = vadd.f32 %v350_v54, %v277_v53 }
 0x26e   :  { %v430_v56 = vpop.f32.mrf.mxu0 }
 0x26f   :  { %354 = vst [vmem:[#allocation3] sm:$0x1] %v351_v55 }
 0x270   :  { %448 = shalt.err (!%p445_p4)
}
 0x271   :  { %364 = dma.vmem_to_hbm [thread:$0]  %s362_s28, 16, %s592_s7, [#allocation4]  }
 0x272   :  { %457 = dma.done.wait [#allocation4], 16  }
 0x273   :  { %458 = vsyncadd [#allocation4], 4294967280 }
 0x274   :  { %368 = vsyncpa [#allocation4], 1 }

</bundles_post_ra>
